<compile_context>
chip_gen: v7x
topology: tpu7x:2x2x1
jax: 0.10.0
libtpu: 0.0.40
codegen_flags: <defaults>
</compile_context>

<pallas_src>
import math

import jax
import jax.numpy as jnp
from jax.experimental import pallas as pl
from jax.experimental.pallas import tpu as pltpu

IGNORE_INDEX = 255


def _budgets():
    """(pass-1 logits-block byte target, scoped-VMEM limit) per chip generation."""
    try:
        vmem_cap = pltpu.get_tpu_info().vmem_capacity_bytes
    except Exception:
        vmem_cap = 0
    if vmem_cap >= (100 << 20):          # v5e / v6e: 128 MiB physical VMEM
        return 6 << 20, 64 << 20
    return 3 << 20, 40 << 20             # v7x (64 MiB physical) / unknown: conservative


def _largest_div128(hw, cap):
    """Largest multiple-of-128 divisor of hw (hw % 128 == 0) that is <= cap."""
    t = (min(cap, hw) // 128) * 128
    while t >= 128:
        if hw % t == 0:
            return t
        t -= 128
    return 128


def _choose_tiles(hw, c, block_bytes):
    """Pick the pass-1 lane tile and the padded pixel count HWp (multiple of tile).

    HW is padded (labels padded with IGNORE_INDEX -> semantics preserved) instead of
    falling back to a giant full-row block when HW % 128 != 0, and an even split is
    used when HW has no friendly multiple-of-128 divisors (avoids 128-lane tiles).
    """
    c_pad = ((c + 7) // 8) * 8                              # sublane padding of C
    cap = max(128, (block_bytes // (4 * c_pad)) // 128 * 128)
    hw128 = ((hw + 127) // 128) * 128
    if hw128 <= cap:
        return hw128, hw128                                 # single block per n
    tile = _largest_div128(hw128, cap)
    if tile >= 4096:                                        # friendly divisor, no extra pad
        return tile, hw128
    # No friendly divisor (e.g. 769*769 -> 128*prime): even split + a little padding.
    nblk = -(-hw128 // cap)
    tile = -(-hw128 // (nblk * 128)) * 128
    return tile, nblk * tile


def _make_pass1_kernel(static_key):
    """static_key = -log(thresh); picks <= thresh  <=>  ce >= static_key."""

    def kernel(logits_ref, labels_ref, ce_ref, gate_ref, ssum_ref, scnt_ref):
        @pl.when(pl.program_id(1) == 0)
        def _():
            gate_ref[...] = jnp.zeros_like(gate_ref)
            ssum_ref[...] = jnp.zeros_like(ssum_ref)
            scnt_ref[...] = jnp.zeros_like(scnt_ref)

        x = logits_ref[...].astype(jnp.float32)             # (1, C, T)
        lbl = labels_ref[...]                                # (1, 1, T), native dtype
        invalid = lbl == IGNORE_INDEX
        lbl_safe = jnp.where(invalid, 0, lbl).astype(jnp.int32)

        # numerically stable log-softmax over the class (sublane) axis
        m = jnp.max(x, axis=1, keepdims=True)                # (1, 1, T)
        e = jnp.exp(x - m)
        lse = jnp.log(jnp.sum(e, axis=1, keepdims=True)) + m

        # gather the labeled-class logit via a single one-hot masked reduce
        cls = jax.lax.broadcasted_iota(jnp.int32, x.shape, 1)
        pick_logit = jnp.sum(jnp.where(cls == lbl_safe, x, 0.0),
                             axis=1, keepdims=True)          # (1, 1, T)
        ce = lse - pick_logit                                # per-pixel CE, >= 0 for valid

        # CE stream: -1.0 sentinel marks ignored pixels (valid CE is always >= 0),
        # so neither the selection fallback nor pass 2 ever reads labels again.
        ce_ref[...] = jnp.where(invalid, -1.0, ce)

        # OHEM bookkeeping in key (= CE) space.  Ignored pixels get key 0.0,
        # exactly equivalent to picks == 1.0 in the reference sort.
        key = jnp.where(invalid, 0.0, ce)
        gate = key >= static_key                             # picks <= thresh
        keep = jnp.logical_and(jnp.logical_not(invalid), gate)
        gate_ref[...] += jnp.sum(gate.astype(jnp.int32), axis=2, keepdims=True)
        ssum_ref[...] += jnp.sum(jnp.where(keep, ce, 0.0), axis=2, keepdims=True)
        scnt_ref[...] += jnp.sum(keep.astype(jnp.int32), axis=2, keepdims=True)

    return kernel


def _pass2_kernel(thr_ref, ce_ref, sum_ref, cnt_ref):
    """Rare fallback: masked sum/count of CE with the k-th-smallest-pick threshold."""
    @pl.when(pl.program_id(1) == 0)
    def _():
        sum_ref[...] = jnp.zeros_like(sum_ref)
        cnt_ref[...] = jnp.zeros_like(cnt_ref)

    thr = thr_ref[0]                                         # scalar from SMEM
    ce = ce_ref[...]                                         # (1, 1, T2); -1.0 => ignored/padded
    keep = jnp.logical_and(ce >= 0.0, ce >= thr)
    sum_ref[...] += jnp.sum(jnp.where(keep, ce, 0.0), axis=2, keepdims=True)
    cnt_ref[...] += jnp.sum(keep.astype(jnp.float32), axis=2, keepdims=True)


def ohem_ce_loss(logits_nchw, labels_nhw, thresh, n_min):
    N, C, H, W = logits_nchw.shape
    HW = H * W
    P = N * HW
    assert thresh > 0.0
    assert 0 <= n_min < P

    block_bytes, vmem_limit = _budgets()
    tile, HWp = _choose_tiles(HW, C, block_bytes)
    grid = (N, HWp // tile)

    logits3d = logits_nchw.reshape(N, C, HW)
    labels3d = labels_nhw.reshape(N, 1, HW)                  # native label dtype, no astype
    if HWp != HW:
        pad = HWp - HW
        logits3d = jnp.pad(logits3d, ((0, 0), (0, 0), (0, pad)))
        labels3d = jnp.pad(labels3d, ((0, 0), (0, 0), (0, pad)),
                           constant_values=IGNORE_INDEX)

    static_key = float(-math.log(thresh))                    # picks <= thresh <=> ce >= static_key

    # Pass 1: CE stream + fused per-batch (gate count, static-thresh sum/count).
    ce, gate_p, ssum_p, scnt_p = pl.pallas_call(
        _make_pass1_kernel(static_key),
        out_shape=(jax.ShapeDtypeStruct((N, 1, HWp), jnp.float32),
                   jax.ShapeDtypeStruct((N, 1, 1), jnp.int32),
                   jax.ShapeDtypeStruct((N, 1, 1), jnp.float32),
                   jax.ShapeDtypeStruct((N, 1, 1), jnp.int32)),
        grid=grid,
        in_specs=[pl.BlockSpec((1, C, tile), lambda n, j: (n, 0, j)),
                  pl.BlockSpec((1, 1, tile), lambda n, j: (n, 0, j))],
        out_specs=(pl.BlockSpec((1, 1, tile), lambda n, j: (n, 0, j)),
                   pl.BlockSpec((1, 1, 1), lambda n, j: (n, 0, 0)),
                   pl.BlockSpec((1, 1, 1), lambda n, j: (n, 0, 0)),
                   pl.BlockSpec((1, 1, 1), lambda n, j: (n, 0, 0))),
        compiler_params=pltpu.CompilerParams(
            dimension_semantics=("parallel", "arbitrary"),
            vmem_limit_bytes=vmem_limit),
    )(logits3d, labels3d)

    gate_total = jnp.sum(gate_p)                             # count(picks <= thresh), exact int32
    static_loss = jnp.sum(ssum_p) / jnp.sum(scnt_p).astype(jnp.float32)

    # Pass-2 tile is decoupled from pass 1 (bigger blocks; ce is only 4 B/pixel).
    tile2 = _largest_div128(HWp, 256 * 1024)
    grid2 = (N, HWp // tile2)

    def _fallback(ce_arr):
        # Fewer than n_min+1 pixels clear the static threshold, so the OHEM threshold
        # is the (n_min+1)-th smallest pick == (n_min+1)-th largest CE key.
        keys = jnp.where(ce_arr < 0.0, 0.0, ce_arr).reshape(N * HWp)
        # TODO(synk): replace top_k with a Pallas counting/histogram select for huge P.
        kth_key = jax.lax.top_k(keys, n_min + 1)[0][n_min]
        thr = jnp.minimum(jnp.float32(static_key), kth_key).reshape(1)
        sums, cnts = pl.pallas_call(
            _pass2_kernel,
            out_shape=(jax.ShapeDtypeStruct((N, 1, 1), jnp.float32),
                       jax.ShapeDtypeStruct((N, 1, 1), jnp.float32)),
            grid=grid2,
            in_specs=[pl.BlockSpec(memory_space=pltpu.MemorySpace.SMEM),
                      pl.BlockSpec((1, 1, tile2), lambda n, j: (n, 0, j))],
            out_specs=(pl.BlockSpec((1, 1, 1), lambda n, j: (n, 0, 0)),
                       pl.BlockSpec((1, 1, 1), lambda n, j: (n, 0, 0))),
            compiler_params=pltpu.CompilerParams(
                dimension_semantics=("parallel", "arbitrary"),
                vmem_limit_bytes=vmem_limit),
        )(thr, ce_arr)
        return jnp.sum(sums) / jnp.sum(cnts)

    # Common case: the static threshold already keeps >= n_min+1 pixels, so the
    # fused pass-1 partials ARE the answer and neither top_k nor pass 2 runs.
    return jax.lax.cond(gate_total >= n_min + 1, lambda _: static_loss, _fallback, ce)


def ohem_ce_loss_ref(logits_nchw, labels_nhw, thresh, n_min):
    """Pure-JAX reference mirroring the PyTorch forward exactly."""
    N, C, H, W = logits_nchw.shape
    P = N * H * W
    logits = jnp.transpose(logits_nchw, (0, 2, 3, 1)).reshape(P, C).astype(jnp.float32)
    labels = labels_nhw.reshape(P)
    logp = jax.nn.log_softmax(logits, axis=-1)
    invalid = labels == IGNORE_INDEX
    lbl_safe = jnp.where(invalid, 0, labels)
    pick_logp = jnp.take_along_axis(logp, lbl_safe[:, None].astype(jnp.int32), axis=-1)[:, 0]
    picks = jnp.where(invalid, 1.0, jnp.exp(pick_logp))
    sorteds = jnp.sort(picks)
    t = jnp.maximum(jnp.float32(thresh), sorteds[n_min])
    keep = jnp.logical_and(~invalid, picks <= t)
    ce = -pick_logp
    return jnp.sum(jnp.where(keep, ce, 0.0)) / jnp.sum(keep.astype(jnp.float32))


if __name__ == "__main__":
    key = jax.random.PRNGKey(0)
    k_logits, k_labels = jax.random.split(key)

    N, C, H, W = 2, 4, 16, 16
    logits = jax.random.normal(k_logits, (N, C, H, W), dtype=jnp.float32)
    labels = jax.random.randint(k_labels, (N, H, W), 0, C, dtype=jnp.int32)
    labels = labels.at[0, :2, :].set(IGNORE_INDEX)           # some ignored pixels

    loss_fn = jax.jit(ohem_ce_loss, static_argnums=(2, 3))

    # Case 1 (common training regime): plenty of pixels below the static
    # threshold -> gate fires, single-pass path, no top_k / pass 2 executed.
    thresh, n_min = 0.7, (N * H * W) // 4
    loss = jax.block_until_ready(loss_fn(logits, labels, thresh, n_min))
    loss_ref = jax.block_until_ready(ohem_ce_loss_ref(logits, labels, thresh, n_min))
    assert jnp.allclose(loss, loss_ref, rtol=1e-5, atol=1e-5), (loss, loss_ref)

    # Case 2 (rare regime): very low static threshold -> k-th-smallest-pick
    # fallback (top_k + pass 2) is exercised.
    thresh2, n_min2 = 0.05, (N * H * W) // 4
    loss2 = jax.block_until_ready(loss_fn(logits, labels, thresh2, n_min2))
    loss2_ref = jax.block_until_ready(ohem_ce_loss_ref(logits, labels, thresh2, n_min2))
    assert jnp.allclose(loss2, loss2_ref, rtol=1e-5, atol=1e-5), (loss2, loss2_ref)

    print("KERNEL_OK")
</pallas_src>

<mosaic_0001>
module attributes {stable_mosaic.version = 11 : i64} {
  func.func @kernel(%arg0: i32, %arg1: i32, %arg2: memref<1x4x256xf32, #tpu.memory_space<vmem>>, %arg3: memref<1x1x256xi32, #tpu.memory_space<vmem>>, %arg4: memref<1x1x256xf32, #tpu.memory_space<vmem>>, %arg5: memref<1x1x1xi32, #tpu.memory_space<vmem>>, %arg6: memref<1x1x1xf32, #tpu.memory_space<vmem>>, %arg7: memref<1x1x1xi32, #tpu.memory_space<vmem>>) attributes {dimension_semantics = [#tpu.dimension_semantics<parallel>, #tpu.dimension_semantics<arbitrary>], iteration_bounds = array<i64: 2, 1>, scalar_prefetch = 0 : i64, scratch_operands = 0 : i64, tpu.core_type = #tpu.core_type<tc>, window_params = [{transform_indices = @transform_0, window_bounds = array<i64: 1, 4, 256>}, {transform_indices = @transform_1, window_bounds = array<i64: 1, 1, 256>}, {transform_indices = @transform_2, window_bounds = array<i64: 1, 1, 256>}, {transform_indices = @transform_3, window_bounds = array<i64: 1, 1, 1>}, {transform_indices = @transform_4, window_bounds = array<i64: 1, 1, 1>}, {transform_indices = @transform_5, window_bounds = array<i64: 1, 1, 1>}]} {
    %c0_i32 = arith.constant 0 : i32
    %0 = arith.cmpi eq, %arg1, %c0_i32 : i32
    %1 = arith.extui %0 : i1 to i32
    %c0_i32_0 = arith.constant 0 : i32
    %2 = arith.cmpi ne, %1, %c0_i32_0 : i32
    scf.if %2 {
      %c0_i32_39 = arith.constant 0 : i32
      %54 = vector.broadcast %c0_i32_39 : i32 to vector<1x1x1xi32>
      %c0_40 = arith.constant 0 : index
      %c0_41 = arith.constant 0 : index
      %c0_42 = arith.constant 0 : index
      %55 = vector.load %arg5[%c0_40, %c0_41, %c0_42] : memref<1x1x1xi32, #tpu.memory_space<vmem>>, vector<1x1x1xi32>
      tpu.vector_store %arg5[%c0_40, %c0_41, %c0_42], %54 {strides = array<i32>} : memref<1x1x1xi32, #tpu.memory_space<vmem>>, vector<1x1x1xi32>,
      %cst_43 = arith.constant 0.000000e+00 : f32
      %56 = vector.broadcast %cst_43 : f32 to vector<1x1x1xf32>
      %c0_44 = arith.constant 0 : index
      %c0_45 = arith.constant 0 : index
      %c0_46 = arith.constant 0 : index
      %57 = vector.load %arg6[%c0_44, %c0_45, %c0_46] : memref<1x1x1xf32, #tpu.memory_space<vmem>>, vector<1x1x1xf32>
      tpu.vector_store %arg6[%c0_44, %c0_45, %c0_46], %56 {strides = array<i32>} : memref<1x1x1xf32, #tpu.memory_space<vmem>>, vector<1x1x1xf32>,
      %c0_i32_47 = arith.constant 0 : i32
      %58 = vector.broadcast %c0_i32_47 : i32 to vector<1x1x1xi32>
      %c0_48 = arith.constant 0 : index
      %c0_49 = arith.constant 0 : index
      %c0_50 = arith.constant 0 : index
      %59 = vector.load %arg7[%c0_48, %c0_49, %c0_50] : memref<1x1x1xi32, #tpu.memory_space<vmem>>, vector<1x1x1xi32>
      tpu.vector_store %arg7[%c0_48, %c0_49, %c0_50], %58 {strides = array<i32>} : memref<1x1x1xi32, #tpu.memory_space<vmem>>, vector<1x1x1xi32>,
    } else {
    }
    %c0 = arith.constant 0 : index
    %c0_1 = arith.constant 0 : index
    %c0_2 = arith.constant 0 : index
    %3 = vector.load %arg2[%c0, %c0_1, %c0_2] : memref<1x4x256xf32, #tpu.memory_space<vmem>>, vector<1x4x256xf32>
    %c0_3 = arith.constant 0 : index
    %c0_4 = arith.constant 0 : index
    %c0_5 = arith.constant 0 : index
    %4 = vector.load %arg3[%c0_3, %c0_4, %c0_5] : memref<1x1x256xi32, #tpu.memory_space<vmem>>, vector<1x1x256xi32>
    %c255_i32 = arith.constant 255 : i32
    %5 = vector.broadcast %c255_i32 : i32 to vector<1x1x256xi32>
    %6 = arith.cmpi eq, %4, %5 : vector<1x1x256xi32>
    %c0_i32_6 = arith.constant 0 : i32
    %7 = vector.broadcast %c0_i32_6 : i32 to vector<1x1x256xi32>
    %8 = arith.select %6, %7, %4 : vector<1x1x256xi1>, vector<1x1x256xi32>
    %cst = arith.constant dense<0xFF800000> : vector<1x256xf32>
    %9 = vector.multi_reduction <maximumf>, %3, %cst [1] : vector<1x4x256xf32> to vector<1x256xf32>
    %10 = vector.shape_cast %9 : vector<1x256xf32> to vector<1x1x256xf32>
    %11 = vector.broadcast %10 : vector<1x1x256xf32> to vector<1x4x256xf32>
    %12 = arith.subf %3, %11 : vector<1x4x256xf32>
    %13 = math.exp %12 : vector<1x4x256xf32>
    %cst_7 = arith.constant dense<0.000000e+00> : vector<1x256xf32>
    %14 = vector.multi_reduction <add>, %13, %cst_7 [1] : vector<1x4x256xf32> to vector<1x256xf32>
    %15 = vector.shape_cast %14 : vector<1x256xf32> to vector<1x1x256xf32>
    %16 = math.log %15 : vector<1x1x256xf32>
    %17 = arith.addf %16, %10 : vector<1x1x256xf32>
    %18 = tpu.iota {dimensions = array<i32: 1>} : vector<1x4x256xi32>
    %19 = vector.broadcast %8 : vector<1x1x256xi32> to vector<1x4x256xi32>
    %20 = arith.cmpi eq, %18, %19 : vector<1x4x256xi32>
    %cst_8 = arith.constant 0.000000e+00 : f32
    %21 = vector.broadcast %cst_8 : f32 to vector<1x4x256xf32>
    %22 = arith.select %20, %3, %21 : vector<1x4x256xi1>, vector<1x4x256xf32>
    %cst_9 = arith.constant dense<0.000000e+00> : vector<1x256xf32>
    %23 = vector.multi_reduction <add>, %22, %cst_9 [1] : vector<1x4x256xf32> to vector<1x256xf32>
    %24 = vector.shape_cast %23 : vector<1x256xf32> to vector<1x1x256xf32>
    %25 = arith.subf %17, %24 : vector<1x1x256xf32>
    %cst_10 = arith.constant -1.000000e+00 : f32
    %26 = vector.broadcast %cst_10 : f32 to vector<1x1x256xf32>
    %27 = arith.select %6, %26, %25 : vector<1x1x256xi1>, vector<1x1x256xf32>
    %c0_11 = arith.constant 0 : index
    %c0_12 = arith.constant 0 : index
    %c0_13 = arith.constant 0 : index
    %28 = vector.load %arg4[%c0_11, %c0_12, %c0_13] : memref<1x1x256xf32, #tpu.memory_space<vmem>>, vector<1x1x256xf32>
    tpu.vector_store %arg4[%c0_11, %c0_12, %c0_13], %27 {strides = array<i32>} : memref<1x1x256xf32, #tpu.memory_space<vmem>>, vector<1x1x256xf32>,
    %cst_14 = arith.constant 0.000000e+00 : f32
    %29 = vector.broadcast %cst_14 : f32 to vector<1x1x256xf32>
    %30 = arith.select %6, %29, %25 : vector<1x1x256xi1>, vector<1x1x256xf32>
    %cst_15 = arith.constant 0.356674939 : f32
    %31 = vector.broadcast %cst_15 : f32 to vector<1x1x256xf32>
    %32 = arith.cmpf oge, %30, %31 : vector<1x1x256xf32>
    %cst_16 = arith.constant dense<true> : vector<1x1x256xi1>
    %33 = arith.xori %6, %cst_16 : vector<1x1x256xi1>
    %34 = arith.andi %33, %32 : vector<1x1x256xi1>
    %c0_17 = arith.constant 0 : index
    %c0_18 = arith.constant 0 : index
    %c0_19 = arith.constant 0 : index
    %35 = vector.load %arg5[%c0_17, %c0_18, %c0_19] : memref<1x1x1xi32, #tpu.memory_space<vmem>>, vector<1x1x1xi32>
    %36 = arith.extui %32 : vector<1x1x256xi1> to vector<1x1x256xi32>
    %cst_20 = arith.constant dense<0> : vector<1x1xi32>
    %37 = vector.multi_reduction <add>, %36, %cst_20 [2] : vector<1x1x256xi32> to vector<1x1xi32>
    %38 = vector.shape_cast %37 : vector<1x1xi32> to vector<1x1x1xi32>
    %39 = arith.addi %35, %38 : vector<1x1x1xi32>
    %c0_21 = arith.constant 0 : index
    %c0_22 = arith.constant 0 : index
    %c0_23 = arith.constant 0 : index
    %40 = vector.load %arg5[%c0_21, %c0_22, %c0_23] : memref<1x1x1xi32, #tpu.memory_space<vmem>>, vector<1x1x1xi32>
    tpu.vector_store %arg5[%c0_21, %c0_22, %c0_23], %39 {strides = array<i32>} : memref<1x1x1xi32, #tpu.memory_space<vmem>>, vector<1x1x1xi32>,
    %c0_24 = arith.constant 0 : index
    %c0_25 = arith.constant 0 : index
    %c0_26 = arith.constant 0 : index
    %41 = vector.load %arg6[%c0_24, %c0_25, %c0_26] : memref<1x1x1xf32, #tpu.memory_space<vmem>>, vector<1x1x1xf32>
    %cst_27 = arith.constant 0.000000e+00 : f32
    %42 = vector.broadcast %cst_27 : f32 to vector<1x1x256xf32>
    %43 = arith.select %34, %25, %42 : vector<1x1x256xi1>, vector<1x1x256xf32>
    %cst_28 = arith.constant dense<0.000000e+00> : vector<1x1xf32>
    %44 = vector.multi_reduction <add>, %43, %cst_28 [2] : vector<1x1x256xf32> to vector<1x1xf32>
    %45 = vector.shape_cast %44 : vector<1x1xf32> to vector<1x1x1xf32>
    %46 = arith.addf %41, %45 : vector<1x1x1xf32>
    %c0_29 = arith.constant 0 : index
    %c0_30 = arith.constant 0 : index
    %c0_31 = arith.constant 0 : index
    %47 = vector.load %arg6[%c0_29, %c0_30, %c0_31] : memref<1x1x1xf32, #tpu.memory_space<vmem>>, vector<1x1x1xf32>
    tpu.vector_store %arg6[%c0_29, %c0_30, %c0_31], %46 {strides = array<i32>} : memref<1x1x1xf32, #tpu.memory_space<vmem>>, vector<1x1x1xf32>,
    %c0_32 = arith.constant 0 : index
    %c0_33 = arith.constant 0 : index
    %c0_34 = arith.constant 0 : index
    %48 = vector.load %arg7[%c0_32, %c0_33, %c0_34] : memref<1x1x1xi32, #tpu.memory_space<vmem>>, vector<1x1x1xi32>
    %49 = arith.extui %34 : vector<1x1x256xi1> to vector<1x1x256xi32>
    %cst_35 = arith.constant dense<0> : vector<1x1xi32>
    %50 = vector.multi_reduction <add>, %49, %cst_35 [2] : vector<1x1x256xi32> to vector<1x1xi32>
    %51 = vector.shape_cast %50 : vector<1x1xi32> to vector<1x1x1xi32>
    %52 = arith.addi %48, %51 : vector<1x1x1xi32>
    %c0_36 = arith.constant 0 : index
    %c0_37 = arith.constant 0 : index
    %c0_38 = arith.constant 0 : index
    %53 = vector.load %arg7[%c0_36, %c0_37, %c0_38] : memref<1x1x1xi32, #tpu.memory_space<vmem>>, vector<1x1x1xi32>
    tpu.vector_store %arg7[%c0_36, %c0_37, %c0_38], %52 {strides = array<i32>} : memref<1x1x1xi32, #tpu.memory_space<vmem>>, vector<1x1x1xi32>,
    return
  }
  func.func @transform_0(%arg0: i32, %arg1: i32) -> (i32, i32, i32) {
    %c0_i32 = arith.constant 0 : i32
    %c0_i32_0 = arith.constant 0 : i32
    return %arg0, %c0_i32, %arg1 : i32, i32, i32
  }
  func.func @transform_1(%arg0: i32, %arg1: i32) -> (i32, i32, i32) {
    %c0_i32 = arith.constant 0 : i32
    %c0_i32_0 = arith.constant 0 : i32
    return %arg0, %c0_i32, %arg1 : i32, i32, i32
  }
  func.func @transform_2(%arg0: i32, %arg1: i32) -> (i32, i32, i32) {
    %c0_i32 = arith.constant 0 : i32
    %c0_i32_0 = arith.constant 0 : i32
    return %arg0, %c0_i32, %arg1 : i32, i32, i32
  }
  func.func @transform_3(%arg0: i32, %arg1: i32) -> (i32, i32, i32) {
    %c0_i32 = arith.constant 0 : i32
    %c0_i32_0 = arith.constant 0 : i32
    %c0_i32_1 = arith.constant 0 : i32
    return %arg0, %c0_i32, %c0_i32_0 : i32, i32, i32
  }
  func.func @transform_4(%arg0: i32, %arg1: i32) -> (i32, i32, i32) {
    %c0_i32 = arith.constant 0 : i32
    %c0_i32_0 = arith.constant 0 : i32
    %c0_i32_1 = arith.constant 0 : i32
    return %arg0, %c0_i32, %c0_i32_0 : i32, i32, i32
  }
  func.func @transform_5(%arg0: i32, %arg1: i32) -> (i32, i32, i32) {
    %c0_i32 = arith.constant 0 : i32
    %c0_i32_0 = arith.constant 0 : i32
    %c0_i32_1 = arith.constant 0 : i32
    return %arg0, %c0_i32, %c0_i32_0 : i32, i32, i32
  }
}

module attributes {stable_mosaic.version = 11 : i64} {
  func.func @_pass2_kernel(%arg0: i32, %arg1: i32, %arg2: memref<1xf32, #tpu.memory_space<smem>>, %arg3: memref<1x1x256xf32, #tpu.memory_space<vmem>>, %arg4: memref<1x1x1xf32, #tpu.memory_space<vmem>>, %arg5: memref<1x1x1xf32, #tpu.memory_space<vmem>>) attributes {dimension_semantics = [#tpu.dimension_semantics<parallel>, #tpu.dimension_semantics<arbitrary>], iteration_bounds = array<i64: 2, 1>, scalar_prefetch = 0 : i64, scratch_operands = 0 : i64, tpu.core_type = #tpu.core_type<tc>, window_params = [{transform_indices = @transform_0, window_bounds = array<i64: 1>}, {transform_indices = @transform_1, window_bounds = array<i64: 1, 1, 256>}, {transform_indices = @transform_2, window_bounds = array<i64: 1, 1, 1>}, {transform_indices = @transform_3, window_bounds = array<i64: 1, 1, 1>}]} {
    %c0_i32 = arith.constant 0 : i32
    %0 = arith.cmpi eq, %arg1, %c0_i32 : i32
    %1 = arith.extui %0 : i1 to i32
    %c0_i32_0 = arith.constant 0 : i32
    %2 = arith.cmpi ne, %1, %c0_i32_0 : i32
    scf.if %2 {
      %cst_19 = arith.constant 0.000000e+00 : f32
      %24 = vector.broadcast %cst_19 : f32 to vector<1x1x1xf32>
      %c0_20 = arith.constant 0 : index
      %c0_21 = arith.constant 0 : index
      %c0_22 = arith.constant 0 : index
      %25 = vector.load %arg4[%c0_20, %c0_21, %c0_22] : memref<1x1x1xf32, #tpu.memory_space<vmem>>, vector<1x1x1xf32>
      tpu.vector_store %arg4[%c0_20, %c0_21, %c0_22], %24 {strides = array<i32>} : memref<1x1x1xf32, #tpu.memory_space<vmem>>, vector<1x1x1xf32>,
      %cst_23 = arith.constant 0.000000e+00 : f32
      %26 = vector.broadcast %cst_23 : f32 to vector<1x1x1xf32>
      %c0_24 = arith.constant 0 : index
      %c0_25 = arith.constant 0 : index
      %c0_26 = arith.constant 0 : index
      %27 = vector.load %arg5[%c0_24, %c0_25, %c0_26] : memref<1x1x1xf32, #tpu.memory_space<vmem>>, vector<1x1x1xf32>
      tpu.vector_store %arg5[%c0_24, %c0_25, %c0_26], %26 {strides = array<i32>} : memref<1x1x1xf32, #tpu.memory_space<vmem>>, vector<1x1x1xf32>,
    } else {
    }
    %c0 = arith.constant 0 : index
    %3 = memref.load %arg2[%c0] : memref<1xf32, #tpu.memory_space<smem>>
    %c0_1 = arith.constant 0 : index
    %c0_2 = arith.constant 0 : index
    %c0_3 = arith.constant 0 : index
    %4 = vector.load %arg3[%c0_1, %c0_2, %c0_3] : memref<1x1x256xf32, #tpu.memory_space<vmem>>, vector<1x1x256xf32>
    %cst = arith.constant 0.000000e+00 : f32
    %5 = vector.broadcast %cst : f32 to vector<1x1x256xf32>
    %6 = arith.cmpf oge, %4, %5 : vector<1x1x256xf32>
    %7 = vector.broadcast %3 : f32 to vector<1x1x256xf32>
    %8 = arith.cmpf oge, %4, %7 : vector<1x1x256xf32>
    %9 = arith.andi %6, %8 : vector<1x1x256xi1>
    %c0_4 = arith.constant 0 : index
    %c0_5 = arith.constant 0 : index
    %c0_6 = arith.constant 0 : index
    %10 = vector.load %arg4[%c0_4, %c0_5, %c0_6] : memref<1x1x1xf32, #tpu.memory_space<vmem>>, vector<1x1x1xf32>
    %cst_7 = arith.constant 0.000000e+00 : f32
    %11 = vector.broadcast %cst_7 : f32 to vector<1x1x256xf32>
    %12 = arith.select %9, %4, %11 : vector<1x1x256xi1>, vector<1x1x256xf32>
    %cst_8 = arith.constant dense<0.000000e+00> : vector<1x1xf32>
    %13 = vector.multi_reduction <add>, %12, %cst_8 [2] : vector<1x1x256xf32> to vector<1x1xf32>
    %14 = vector.shape_cast %13 : vector<1x1xf32> to vector<1x1x1xf32>
    %15 = arith.addf %10, %14 : vector<1x1x1xf32>
    %c0_9 = arith.constant 0 : index
    %c0_10 = arith.constant 0 : index
    %c0_11 = arith.constant 0 : index
    %16 = vector.load %arg4[%c0_9, %c0_10, %c0_11] : memref<1x1x1xf32, #tpu.memory_space<vmem>>, vector<1x1x1xf32>
    tpu.vector_store %arg4[%c0_9, %c0_10, %c0_11], %15 {strides = array<i32>} : memref<1x1x1xf32, #tpu.memory_space<vmem>>, vector<1x1x1xf32>,
    %c0_12 = arith.constant 0 : index
    %c0_13 = arith.constant 0 : index
    %c0_14 = arith.constant 0 : index
    %17 = vector.load %arg5[%c0_12, %c0_13, %c0_14] : memref<1x1x1xf32, #tpu.memory_space<vmem>>, vector<1x1x1xf32>
    %18 = arith.extui %9 : vector<1x1x256xi1> to vector<1x1x256xi32>
    %19 = arith.sitofp %18 : vector<1x1x256xi32> to vector<1x1x256xf32>
    %cst_15 = arith.constant dense<0.000000e+00> : vector<1x1xf32>
    %20 = vector.multi_reduction <add>, %19, %cst_15 [2] : vector<1x1x256xf32> to vector<1x1xf32>
    %21 = vector.shape_cast %20 : vector<1x1xf32> to vector<1x1x1xf32>
    %22 = arith.addf %17, %21 : vector<1x1x1xf32>
    %c0_16 = arith.constant 0 : index
    %c0_17 = arith.constant 0 : index
    %c0_18 = arith.constant 0 : index
    %23 = vector.load %arg5[%c0_16, %c0_17, %c0_18] : memref<1x1x1xf32, #tpu.memory_space<vmem>>, vector<1x1x1xf32>
    tpu.vector_store %arg5[%c0_16, %c0_17, %c0_18], %22 {strides = array<i32>} : memref<1x1x1xf32, #tpu.memory_space<vmem>>, vector<1x1x1xf32>,
    return
  }
  func.func @transform_0(%arg0: i32, %arg1: i32) -> i32 {
    %c0_i32 = arith.constant 0 : i32
    %c0_i32_0 = arith.constant 0 : i32
    return %c0_i32 : i32
  }
  func.func @transform_1(%arg0: i32, %arg1: i32) -> (i32, i32, i32) {
    %c0_i32 = arith.constant 0 : i32
    %c0_i32_0 = arith.constant 0 : i32
    return %arg0, %c0_i32, %arg1 : i32, i32, i32
  }
  func.func @transform_2(%arg0: i32, %arg1: i32) -> (i32, i32, i32) {
    %c0_i32 = arith.constant 0 : i32
    %c0_i32_0 = arith.constant 0 : i32
    %c0_i32_1 = arith.constant 0 : i32
    return %arg0, %c0_i32, %c0_i32_0 : i32, i32, i32
  }
  func.func @transform_3(%arg0: i32, %arg1: i32) -> (i32, i32, i32) {
    %c0_i32 = arith.constant 0 : i32
    %c0_i32_0 = arith.constant 0 : i32
    %c0_i32_1 = arith.constant 0 : i32
    return %arg0, %c0_i32, %c0_i32_0 : i32, i32, i32
  }
}

</mosaic_0001>

<bundles_post_ra>
// kernel: ohem_ce_loss.1
= control target key start
LH: loop header
LB: loop body
LE: loop exit
PB: predicated region body
PF: predicated region fallthrough
CT: control target
= control target key end

     0   :  { %s790_s18 = smov 0   ;;  %s792_s19 = smov 0   ;;  %s890_s0 = inlined_call_operand.vmem [shape: f32[2,4,256], index: 0, kind: input, shape index: {}]   ;;  %s891_s1 = inlined_call_operand.vmem [shape: s32[2,1,256], index: 1, kind: input, shape index: {}]   ;;  %s892_s2 = inlined_call_operand.vmem [shape: f32[2,1,256], index: 2, kind: output, shape index: {0}]   ;;  %s893_s3 = inlined_call_operand.vmem [shape: s32[2,1,1], index: 3, kind: output, shape index: {1}]   ;;  %s894_s4 = inlined_call_operand.vmem [shape: f32[2,1,1], index: 4, kind: output, shape index: {2}]   ;;  %s895_s5 = inlined_call_operand.vmem [shape: s32[2,1,1], index: 5, kind: output, shape index: {3}]  }
   0x1   :  { %s794_s20 = smov 0  }
   0x2 LB: > { %s28_s21 = sadd.s32 1, %s750_s19  ;;  %p689_p0 = scmp.ge.s32.totalorder %s754_s20, 1  ;;  %s754_s20 = sphi %s794_s20, %s16_s20   ;;  %s750_s19 = sphi %s792_s19, %s897_s19   ;;  %s746_s18 = sphi %s790_s18, %s896_s18  }
   0x3   : > { %p30_p1 = scmp.ge.s32.totalorder %s28_s21, 2  ;;  %p231_p2 = scmp.lt.s32.totalorder %s754_s20, 3 }
   0x5   : > { %s899_s21 = smov (%p30_p1, %s28_s21), 0  ;;  %p232_p3 = pnand %p689_p0, %p231_p2 }
   0x6   : > { %p284_p4 = scmp.lt.s32.totalorder (!%p232_p3), %s746_s18, 1  ;;  %vm335_vm0 = vcmask (!%p232_p3), 1043456   ;;  %v380_v15 = vlaneseq (!%p232_p3)  ;;  %v756_v57 = vmov (!%p232_p3), 1966171168   ;;  %vm757_vm5 = vmmov (!%p232_p3), 1  }
   0x7   : > { %235 = sbr.rel (%p232_p3) target bundleno = 255 (0xff), region = 28  ;;  %v414_v58 = vunpack.c.l.s4 (!%p232_p3), %v756_v57  ;;  %vm448_vm8 = vcmask (!%p232_p3), 1040384   ;;  %vm324_vm10 = vcmask (!%p232_p3), 0  }
   0x8   : > { %v381_v19 = vshrl.u32 (!%p232_p3), %v380_v15, 7  ;;  %vm431_vm4 = vcmp.lt.s32.totalorder (!%p232_p3), %v380_v15, 256 }
   0xa   : > { %v826_v22 = vsub.s32 (!%p232_p3), 0, %v381_v19  ;;  %v831_v24 = vsub.s32 (!%p232_p3), 1, %v381_v19 }
   0xe   : > { %s901_s18 = smov (!%p284_p4, %s746_s18), 1 }
   0xf   : > { %s696_s22 = sshll.u32 %s901_s18, 3  ;;  %s692_s26 = sshll.u32 %s901_s18, 1 }
  0x10   : > { %s291_s25 = scalar_lea.vmem %s890_s0, %s696_s22  ;;  %s300_s29 = scalar_lea.vmem %s891_s1, %s692_s26 }
  0x11   : > { %v328_v0 = vld [vmem:[%s291_s25] sm:$0xff]  ;;  %s309_s7 = scalar_lea.vmem %s892_s2, %s692_s26  ;;  %s313_s10 = scalar_lea.vmem %s893_s3, %s901_s18 }
  0x12   : > { %v333_v1 = vcombine.high %v328_v0, %v328_v0  ;;  %v336_v2 = vsel %vm335_vm0, %v328_v0, -inf  ;;  %v822_v17 = vld [vmem:[%s300_s29] sm:$0x3]  ;;  %s319_s13 = scalar_lea.vmem %s895_s5, %s901_s18  ;;  %s316_s16 = scalar_lea.vmem %s894_s4, %s901_s18 }
  0x13   : > { %v337_v3 = vrot.slane %v336_v2, 4  ;;  %vm330_vm1 = vcmp.eq.s32.totalorder %v822_v17, 255 }
  0x14   : > { %v343_v4 = vsel %vm335_vm0, %v333_v1, -inf  ;;  %v331_v23 = vsel %vm330_vm1, 0, %v822_v17  ;;  %vm436_vm6 = vmxor %vm330_vm1, %vm757_vm5 }
  0x15   : > { %v338_v5 = vmax.f32 %v336_v2, %v337_v3  ;;  %v344_v6 = vrot.slane %v343_v4, 4  ;;  %v385_v25 = vrot.slane %v331_v23, %v826_v22  ;;  %v389_v26 = vrot.slane %v331_v23, %v831_v24 }
  0x16   : > { %v415_v2 = vunpack.c.0.s8 %v414_v58 }
  0x17   : > { %v339_v7 = vrot.slane %v338_v5, 2  ;;  %v345_v8 = vmax.f32 %v343_v4, %v344_v6  ;;  %vm390_vm2 = vcmp.eq.s32.totalorder %v381_v19, %v385_v25  ;;  %vm391_vm3 = vcmp.eq.s32.totalorder %v381_v19, %v389_v26 }
  0x18   : > { %v392_v27 = vsel %vm390_vm2, %v328_v0, 0.0  ;;  %v393_v31 = vsel %vm391_vm3, %v333_v1, 0.0  ;;  %v418_v6 = vsub.s32 %v415_v2, %v381_v19 }
  0x19   : > { %v340_v9 = vmax.f32 %v338_v5, %v339_v7  ;;  %v346_v10 = vrot.slane %v345_v8, 2  ;;  %v394_v33 = vsel %vm335_vm0, %v392_v27, 0.0  ;;  %v401_v37 = vsel %vm335_vm0, %v393_v31, 0.0 }
  0x1a   : > { %v395_v38 = vrot.slane %v394_v33, 4  ;;  %v402_v41 = vrot.slane %v401_v37, 4 }
  0x1b   : > { %v341_v11 = vrot.slane %v340_v9, 1  ;;  %v347_v12 = vmax.f32 %v345_v8, %v346_v10 }
  0x1c   : > { %v396_v44 = vadd.f32 %v395_v38, %v394_v33  ;;  %v403_v47 = vadd.f32 %v402_v41, %v401_v37 }
  0x1d   : > { %v342_v13 = vmax.f32 %v340_v9, %v341_v11  ;;  %v348_v14 = vrot.slane %v347_v12, 1 }
  0x1e   : > { %v397_v50 = vrot.slane %v396_v44, 2  ;;  %v404_v52 = vrot.slane %v403_v47, 2 }
  0x1f   : > { %v349_v16 = vmax.f32 %v347_v12, %v348_v14  ;;  %v758_v12 = vmov 0  }
  0x20   : > { %v398_v53 = vadd.f32 %v397_v50, %v396_v44  ;;  %v405_v54 = vadd.f32 %v404_v52, %v403_v47  ;;  %325 = vst.msk [vmem:[%s313_s10] sm:$0x1] %vm324_vm10, %v758_v12  ;;  %327 = vst.msk [vmem:[%s319_s13] sm:$0x1] %vm324_vm10, %v758_v12 }
  0x21   : > { %v352_v18 = vcombine.low %v342_v13, %v349_v16 }
  0x22   : > { %v399_v55 = vrot.slane %v398_v53, 1  ;;  %v406_v56 = vrot.slane %v405_v54, 1 }
  0x23   : > { %v354_v20 = vsub.f32 %v328_v0, %v352_v18 }
  0x24   : > { %v400_v61 = vadd.f32 %v399_v55, %v398_v53  ;;  %v407_v1 = vadd.f32 %v406_v56, %v405_v54 }
  0x25   : > { %v355_v21 = vmul.f32 1.442695, %v354_v20 }
  0x27   : > { %726 = vpow2.f32 %v355_v21  ;;  %v487_v54 = vld [vmem:[%s319_s13] sm:$0x1] }
  0x31   : > { %v727_v28 = vpop.eup %726 }
  0x32   : > { %v358_v29 = vcombine.high %v727_v28, %v727_v28  ;;  %v360_v30 = vsel %vm335_vm0, %v727_v28, 0.0 }
  0x33   : > { %v361_v32 = vrot.slane %v360_v30, 4 }
  0x34   : > { %v367_v34 = vsel %vm335_vm0, %v358_v29, 0.0 }
  0x35   : > { %v362_v35 = vadd.f32 %v361_v32, %v360_v30  ;;  %v368_v36 = vrot.slane %v367_v34, 4 }
  0x37   : > { %v363_v39 = vrot.slane %v362_v35, 2  ;;  %v369_v40 = vadd.f32 %v368_v36, %v367_v34 }
  0x39   : > { %v364_v42 = vadd.f32 %v363_v39, %v362_v35  ;;  %v370_v43 = vrot.slane %v369_v40, 2 }
  0x3b   : > { %v365_v45 = vrot.slane %v364_v42, 1  ;;  %v371_v46 = vadd.f32 %v370_v43, %v369_v40 }
  0x3d   : > { %v366_v48 = vadd.f32 %v365_v45, %v364_v42  ;;  %v372_v49 = vrot.slane %v371_v46, 1  ;;  %v438_v45 = vld [vmem:[%s313_s10] sm:$0x1] }
  0x3f   : > { %v373_v51 = vadd.f32 %v372_v49, %v371_v46  ;;  %728 = vlog2.f32 %v366_v48 }
  0x41   : > { %730 = vlog2.f32 %v373_v51 }
  0x49   : > { %v729_v59 = vpop.eup %728 }
  0x4a   : > { %v375_v60 = vmul.f32 0.6931472, %v729_v59 }
  0x4b   : > { %v731_v62 = vpop.eup %730 }
  0x4c   : > { %v377_v63 = vmul.f32 0.6931472, %v731_v62  ;;  %v378_v0 = vadd.f32 %v375_v60, %v342_v13 }
  0x4e   : > { %v379_v3 = vadd.f32 %v377_v63, %v349_v16  ;;  %v408_v4 = vsub.f32 %v378_v0, %v400_v61 }
  0x50   : > { %v409_v5 = vsub.f32 %v379_v3, %v407_v1 }
  0x52   : > { %v412_v7 = vcombine.low %v408_v4, %v409_v5 }
  0x54   : > { %v419_v8 = vrot.slane %v412_v7, %v418_v6 }
  0x56   : > { %v426_v9 = vrot.slane %v419_v8, %v418_v6 }
  0x58   : > { %v434_v10 = vsel %vm330_vm1, 0.0, %v426_v9  ;;  %v428_v11 = vsel %vm330_vm1, -1.0, %v426_v9 }
  0x59   : > { %vm435_vm7 = vcmp.ge.f32.partialorder %v434_v10, 0.35667494  ;;  %433 = vst.msk [vmem:[%s309_s7] sm:$0x3] %vm431_vm4, %v428_v11 }
  0x5a   : > { %v439_v13 = vsel %vm435_vm7, 1, %v758_v12  ;;  %vm437_vm9 = vmand %vm436_vm6, %vm435_vm7 }
  0x5b   : > { %v443_v14 = vrot.slane %v439_v13, %v826_v22  ;;  %v447_v15 = vrot.slane %v439_v13, %v831_v24  ;;  %v488_v16 = vsel %vm437_vm9, 1, %v758_v12  ;;  %v468_v26 = vsel %vm437_vm9, %v426_v9, 0.0 }
  0x5c   : > { %v492_v18 = vrot.slane %v488_v16, %v826_v22  ;;  %v496_v19 = vrot.slane %v488_v16, %v831_v24  ;;  %v473_v32 = vrot.slane %v468_v26, %v826_v22  ;;  %v477_v33 = vrot.slane %v468_v26, %v831_v24 }
  0x5d   : > { %v449_v20 = vsel %vm448_vm8, %v443_v14, 0  ;;  %v450_v17 = vsel %vm448_vm8, %v447_v15, 0  ;;  %v759_v22 = vmov 0.0  }
  0x5e   : > { %v451_v21 = vadd.s32 %v450_v17, %v449_v20  ;;  %v497_v23 = vsel %vm448_vm8, %v492_v18, 0  ;;  %v498_v25 = vsel %vm448_vm8, %v496_v19, 0  ;;  %v480_v38 = vsel %vm448_vm8, %v473_v32, 0.0  ;;  %326 = vst.msk [vmem:[%s316_s16] sm:$0x1] %vm324_vm10, %v759_v22 }
  0x5f   : > { %v499_v27 = vadd.s32 %v498_v25, %v497_v23  ;;  %v481_v39 = vsel %vm448_vm8, %v477_v33, 0.0 }
  0x60   : > { %v453_v28 = vshrl.u32 %v451_v21, 16  ;;  %v452_v29 = vand.u32 65535, %v451_v21  ;;  %v482_v40 = vadd.f32 %v481_v39, %v480_v38 }
  0x61   : > { %v501_v30 = vshrl.u32 %v499_v27, 16  ;;  %v500_v31 = vand.u32 65535, %v499_v27 }
  0x62   : > { %v455_v34 = vcvt.s32.f32 %v453_v28  ;;  %v454_v35 = vcvt.s32.f32 %v452_v29 }
  0x63   : > { %v503_v36 = vcvt.s32.f32 %v501_v30  ;;  %v502_v37 = vcvt.s32.f32 %v500_v31 }
  0x64   : > { %458 = vadd.xlane.f32.xlu0 %v455_v34  ;;  %456 = vadd.xlane.f32.xlu1 %v454_v35 }
  0x65   : > { %v467_v51 = vld [vmem:[%s316_s16] sm:$0x1] }
  0x68   : > { %506 = vadd.xlane.f32.xlu0 %v503_v36  ;;  %504 = vadd.xlane.f32.xlu1 %v502_v37 }
  0x6c   : > { %483 = vadd.xlane.f32.xlu0 %v482_v40 }
  0xf1   : > { %v459_v24 = vpop.xlane.xlu0 %458  ;;  %v457_v41 = vpop.xlane.xlu1 %456 }
  0xf2   : > { %v461_v42 = vcvt.f32.s32 %v459_v24  ;;  %v460_v43 = vcvt.f32.s32 %v457_v41 }
  0xf4   : > { %v462_v44 = vshll.u32 %v461_v42, 16 }
  0xf5   : > { %v507_v46 = vpop.xlane.xlu0 %506  ;;  %v505_v47 = vpop.xlane.xlu1 %504 }
  0xf6   : > { %v463_v48 = vadd.s32 %v462_v44, %v460_v43  ;;  %v509_v49 = vcvt.f32.s32 %v507_v46  ;;  %v508_v50 = vcvt.f32.s32 %v505_v47 }
  0xf8   : > { %v464_v52 = vadd.s32 %v463_v48, %v438_v45  ;;  %v510_v53 = vshll.u32 %v509_v49, 16 }
  0xf9   : > { %v484_v55 = vpop.xlane.xlu0 %483 }
  0xfa   : > { %466 = vst.msk [vmem:[%s313_s10] sm:$0x1] %vm324_vm10, %v464_v52  ;;  %v511_v56 = vadd.s32 %v510_v53, %v508_v50  ;;  %v485_v57 = vadd.f32 %v484_v55, %v467_v51 }
  0xfc   : > { %v512_v58 = vadd.s32 %v511_v56, %v487_v54  ;;  %486 = vst.msk [vmem:[%s316_s16] sm:$0x1] %vm324_vm10, %v485_v57 }
  0xfe   : > { %513 = vst.msk [vmem:[%s319_s13] sm:$0x1] %vm324_vm10, %v512_v58 }
  0xff PF: > { %s16_s20 = sadd.s32 1, %s754_s20   ;;  %s896_s18 = smov %s750_s19 }
 0x100   : > { %p13_p5 = scmp.ge.s32.totalorder %s16_s20, 4   ;;  %s897_s19 = smov %s899_s21 }
 0x102   :  { %15 = sbr.rel (!%p13_p5) target bundleno = 2 (0x2), region = 101 }

// kernel: branch_0_fun.1
= control target key start
LH: loop header
LB: loop body
LE: loop exit
PB: predicated region body
PF: predicated region fallthrough
CT: control target
= control target key end

     0   :  { %s423_s14 = smov 0   ;;  %s425_s15 = smov 0   ;;  %s473_s0 = inlined_call_operand.<no memory space> [shape: f32[1], index: 0, kind: input, shape index: {}]   ;;  %s474_s1 = inlined_call_operand.vmem [shape: f32[2,1,256], index: 1, kind: input, shape index: {}]   ;;  %s475_s2 = inlined_call_operand.vmem [shape: f32[2,1,1], index: 2, kind: output, shape index: {0}]   ;;  %s476_s3 = inlined_call_operand.vmem [shape: f32[2,1,1], index: 3, kind: output, shape index: {1}]  }
   0x1   :  { %9 = sst [smem:[#allocation2]] %s473_s0  ;;  %s427_s16 = smov 0  }
   0x2 LB: > { %s27_s0 = sadd.s32 1, %s393_s15  ;;  %p345_p0 = scmp.ge.s32.totalorder %s397_s16, 1  ;;  %s397_s16 = sphi %s427_s16, %s15_s16   ;;  %s393_s15 = sphi %s425_s15, %s478_s15   ;;  %s389_s14 = sphi %s423_s14, %s477_s14  }
   0x3   : > { %p29_p1 = scmp.ge.s32.totalorder %s27_s0, 2  ;;  %p159_p2 = scmp.lt.s32.totalorder %s397_s16, 3 }
   0x5   : > { %s480_s0 = smov (%p29_p1, %s27_s0), 0  ;;  %p160_p3 = pnand %p345_p0, %p159_p2 }
   0x6   : > { %p188_p4 = scmp.lt.s32.totalorder (!%p160_p3), %s389_s14, 1  ;;  %s209_s17 = sld [smem:[#allocation2]] (!%p160_p3)  ;;  %v218_v0 = vlaneseq (!%p160_p3)  ;;  %vm206_vm0 = vcmask (!%p160_p3), 0   ;;  %v399_v2 = vmov (!%p160_p3), 0.0   ;;  %vm228_vm4 = vcmask (!%p160_p3), 1040384  }
   0x7   : > { %163 = sbr.rel (%p160_p3) target bundleno = 175 (0xaf), region = 28 }
   0x8   : > { %v219_v1 = vshrl.u32 (!%p160_p3), %v218_v0, 7 }
   0xa   : > { %v220_v5 = vsub.s32 (!%p160_p3), 0, %v219_v1  ;;  %v224_v6 = vsub.s32 (!%p160_p3), 1, %v219_v1 }
   0xc   : > { %v212_v4 = vstv (!%p160_p3), %s209_s17 }
   0xe   : > { %s482_s14 = smov (!%p188_p4, %s389_s14), 1 }
   0xf   : > { %s346_s18 = sshll.u32 %s482_s14, 1  ;;  %s448_s21 = scalar_lea.vmem %s475_s2, %s482_s14 }
  0x10   : > { %s194_s24 = scalar_lea.vmem %s474_s1, %s346_s18  ;;  %207 = vst.msk [vmem:[%s448_s21] sm:$0x1] %vm206_vm0, %v399_v2  ;;  %s201_s27 = scalar_lea.vmem %s476_s3, %s482_s14 }
  0x11   : > { %v210_v3 = vld [vmem:[%s194_s24] sm:$0x3]  ;;  %208 = vst.msk [vmem:[%s201_s27] sm:$0x1] %vm206_vm0, %v399_v2 }
  0x12   : > { %vm211_vm1 = vcmp.ge.f32.partialorder %v210_v3, 0.0  ;;  %vm213_vm2 = vcmp.ge.f32.partialorder %v210_v3, %v212_v4 }
  0x13   : > { %vm214_vm3 = vmand %vm211_vm1, %vm213_vm2 }
  0x14   : > { %v216_v7 = vsel %vm214_vm3, %v210_v3, 0.0  ;;  %v347_v8 = vsel %vm214_vm3, 1.0, %v399_v2 }
  0x15   : > { %v221_v9 = vrot.slane %v216_v7, %v220_v5  ;;  %v225_v10 = vrot.slane %v216_v7, %v224_v6  ;;  %v244_v11 = vrot.slane %v347_v8, %v220_v5  ;;  %v248_v12 = vrot.slane %v347_v8, %v224_v6 }
  0x17   : > { %v229_v13 = vsel %vm228_vm4, %v221_v9, 0.0  ;;  %v230_v14 = vsel %vm228_vm4, %v225_v10, 0.0  ;;  %v251_v15 = vsel %vm228_vm4, %v244_v11, 0.0  ;;  %v252_v16 = vsel %vm228_vm4, %v248_v12, 0.0  ;;  %v215_v19 = vld [vmem:[%s448_s21] sm:$0x1] }
  0x18   : > { %v231_v17 = vadd.f32 %v230_v14, %v229_v13  ;;  %v253_v18 = vadd.f32 %v252_v16, %v251_v15  ;;  %v237_v22 = vld [vmem:[%s201_s27] sm:$0x1] }
  0x1a   : > { %232 = vadd.xlane.f32.xlu0 %v231_v17 }
  0x1e   : > { %254 = vadd.xlane.f32.xlu0 %v253_v18 }
  0xa7   : > { %v233_v20 = vpop.xlane.xlu0 %232 }
  0xa8   : > { %v234_v21 = vadd.f32 %v233_v20, %v215_v19 }
  0xaa   : > { %236 = vst.msk [vmem:[%s448_s21] sm:$0x1] %vm206_vm0, %v234_v21 }
  0xab   : > { %v255_v23 = vpop.xlane.xlu0 %254 }
  0xac   : > { %v256_v24 = vadd.f32 %v255_v23, %v237_v22 }
  0xae   : > { %257 = vst.msk [vmem:[%s201_s27] sm:$0x1] %vm206_vm0, %v256_v24 }
  0xaf PF: > { %s15_s16 = sadd.s32 1, %s397_s16   ;;  %s477_s14 = smov %s393_s15 }
  0xb0   : > { %p12_p5 = scmp.ge.s32.totalorder %s15_s16, 4   ;;  %s478_s15 = smov %s480_s0 }
  0xb2   :  { %14 = sbr.rel (!%p12_p5) target bundleno = 2 (0x2), region = 74 }

</bundles_post_ra>
